<compile_context>
chip_gen: v7x
topology: tpu7x:2x2x1
jax: 0.10.0
libtpu: 0.0.40
codegen_flags: <defaults>
</compile_context>

<pallas_src>
import functools

import numpy as np

import jax
import jax.numpy as jnp
from jax.experimental import pallas as pl
from jax.experimental.pallas import tpu as pltpu


def _round_up(x, m):
    return ((x + m - 1) // m) * m


def _arb_kernel(x_ref, w1_ref, b1_ref, w2_ref, b2_ref, o_ref, xs_ref,
                *, W, HW, HWP, Cin, CinP, PAD, conv_dtype):
    """One batch element per grid step, lane-dense (C, H*W) layout.

    x_ref  : (1, Cin, HW)         f32 input, spatial flattened on the lane axis
    w1_ref : (9, Cout, CinP)      3x3 conv taps (BN1 scale folded), conv_dtype
    b1_ref : (Cout, 1)            folded BN1 bias, f32
    w2_ref : (Cout, Cout)         1x1 conv weights (BN2 scale folded), f32
    b2_ref : (Cout, 1)            folded BN2 bias, f32
    o_ref  : (1, Cout, HWP)       f32 output (spatial padded to HWP lanes)
    xs_ref : (CinP, HWP + 2*PAD)  VMEM scratch: zero-halo copy of the input
    """
    # --- stage input into the halo'd scratch; zero ONLY regions readable as pad ---
    xs_ref[:, 0:PAD] = jnp.zeros((CinP, PAD), conv_dtype)
    xs_ref[:, PAD + HW:2 * PAD + HWP] = jnp.zeros((CinP, PAD + HWP - HW), conv_dtype)
    if Cin < CinP:
        xs_ref[Cin:CinP, PAD:PAD + HW] = jnp.zeros((CinP - Cin, HW), conv_dtype)
    xs_ref[0:Cin, PAD:PAD + HW] = x_ref[0].astype(conv_dtype)

    # Column-validity masks for the horizontal taps (the flat layout wraps rows).
    wpos = jax.lax.broadcasted_iota(jnp.int32, (1, HWP), 1) % W
    left_ok = wpos >= 1          # valid when reading column w-1
    right_ok = wpos <= W - 2     # valid when reading column w+1

    # --- 3x3 conv as 9 accumulating MXU dots (no materialized im2col) ---
    y = None
    for ky in range(3):
        for kx in range(3):
            t = ky * 3 + kx
            s = (ky - 1) * W + (kx - 1)                   # flat source offset
            tap = xs_ref[:, PAD + s:PAD + s + HWP]        # (CinP, HWP) conv_dtype
            if kx == 0:
                tap = jnp.where(left_ok, tap, jnp.zeros_like(tap))
            elif kx == 2:
                tap = jnp.where(right_ok, tap, jnp.zeros_like(tap))
            part = jnp.dot(w1_ref[t], tap, preferred_element_type=jnp.float32)
            y = part if y is None else y + part           # (Cout, HWP) f32

    # Folded-BN bias + ReLU (f32).
    y = jnp.maximum(y + b1_ref[...], 0.0)

    # Zero spatial-pad columns so pooling (and the discarded output tail) is exact.
    if HWP != HW:
        valid = jax.lax.broadcasted_iota(jnp.int32, (1, HWP), 1) < HW
        y = jnp.where(valid, y, 0.0)

    # AdaptiveAvgPool2d(1): mean over the true spatial extent.
    pooled = jnp.sum(y, axis=1, keepdims=True) * (1.0 / HW)          # (Cout, 1)

    # 1x1 conv (BN2 scale folded) + bias + sigmoid -> channel attention (f32).
    z = jnp.dot(w2_ref[...], pooled, preferred_element_type=jnp.float32) + b2_ref[...]
    att = jax.nn.sigmoid(z)                                          # (Cout, 1)

    # Channel-wise attention, broadcast over the lane (spatial) axis.
    o_ref[0] = (y * att).astype(o_ref.dtype)


def attention_refinement_block(x_nchw, params, *, conv_dtype=jnp.bfloat16):
    """x_nchw: (N, Cin, H, W) float32.  Returns (N, Cout, H, W) float32."""
    w1, s1, b1, w2, s2, b2 = params
    N, Cin, H, W = x_nchw.shape
    Cout = w1.shape[-1]
    HW = H * W
    HWP = _round_up(HW, 128)                   # lane-dense spatial extent
    itemsize = np.dtype(conv_dtype).itemsize
    sub = 16 if itemsize == 2 else 8           # sublane packing multiple
    CinP = _round_up(Cin, sub)                 # padded input channels
    PAD = _round_up(W + 1, 128)                # lane-aligned halo, >= W+1

    # ---- one-time weight preprocessing (tiny; constant-folds under jit) ----
    # Fold BN1 scale into the 3x3 conv weights; one (Cout, CinP) matrix per tap.
    w1f = w1.astype(jnp.float32) * s1.reshape(1, 1, 1, Cout)          # (3,3,Cin,Cout)
    w1p = jnp.zeros((3, 3, CinP, Cout), jnp.float32).at[:, :, :Cin, :].set(w1f)
    w1taps = jnp.transpose(w1p.reshape(9, CinP, Cout), (0, 2, 1)).astype(conv_dtype)
    b1col = b1.reshape(Cout, 1).astype(jnp.float32)
    # Fold BN2 scale into the 1x1 conv weights; orient for (Cout,Cout)@(Cout,1).
    w2mat = (w2.astype(jnp.float32) * s2.reshape(1, Cout)).T          # (Cout, Cout)
    b2col = b2.reshape(Cout, 1).astype(jnp.float32)

    # NCHW -> (N, Cin, H*W): contiguous reshape (free) — no transpose, no pad pass.
    x_flat = x_nchw.reshape(N, Cin, HW)

    kernel = functools.partial(
        _arb_kernel, W=W, HW=HW, HWP=HWP, Cin=Cin, CinP=CinP, PAD=PAD,
        conv_dtype=conv_dtype)

    cost = pl.CostEstimate(
        flops=2 * N * HWP * 9 * CinP * Cout + 2 * N * Cout * Cout,
        transcendentals=N * Cout,
        bytes_accessed=(4 * (x_flat.size + N * Cout * HWP + Cout * Cout + 2 * Cout)
                        + itemsize * 9 * CinP * Cout),
    )

    # Per-step VMEM footprint: double-buffered in/out blocks + weights + scratch
    # + the f32 y slab, with 2x headroom; clamped to stay v7x-safe.
    vmem_needed = (2 * Cin * HW * 4 + 2 * Cout * HWP * 4
                   + 2 * (9 * CinP * Cout * itemsize + (Cout * Cout + 2 * Cout) * 4)
                   + CinP * (HWP + 2 * PAD) * itemsize
                   + Cout * HWP * 4)
    vmem_limit = int(min(max(2 * vmem_needed, 32 * 1024 * 1024), 64 * 1024 * 1024))

    # TODO(synk): for real BiSeNet ARM shapes (large Cout*H*W) add an H-tile grid
    # axis with a two-phase pooled reduction (and pack several batch elements per
    # step when Cout*HW is tiny) to bound VMEM and fill both v7x TensorCores.
    out_flat = pl.pallas_call(
        kernel,
        out_shape=jax.ShapeDtypeStruct((N, Cout, HWP), jnp.float32),
        grid=(N,),
        in_specs=[
            pl.BlockSpec((1, Cin, HW), lambda n: (n, 0, 0)),
            pl.BlockSpec((9, Cout, CinP), lambda n: (0, 0, 0)),
            pl.BlockSpec((Cout, 1), lambda n: (0, 0)),
            pl.BlockSpec((Cout, Cout), lambda n: (0, 0)),
            pl.BlockSpec((Cout, 1), lambda n: (0, 0)),
        ],
        out_specs=pl.BlockSpec((1, Cout, HWP), lambda n: (n, 0, 0)),
        scratch_shapes=[
            pltpu.VMEM((CinP, HWP + 2 * PAD), conv_dtype),   # halo'd input copy
        ],
        compiler_params=pltpu.CompilerParams(
            dimension_semantics=("parallel",),
            vmem_limit_bytes=vmem_limit,
        ),
        cost_estimate=cost,
    )(x_flat, w1taps, b1col, w2mat, b2col)

    if HWP != HW:
        out_flat = out_flat[:, :, :HW]
    # (N, Cout, H*W) -> NCHW: contiguous reshape (free).
    return out_flat.reshape(N, Cout, H, W)


def init_params(key, cin, cout, eps=1e-5):
    """Deterministic synthetic parameters; BN folded to scale/bias (eval-mode BN)."""
    ks = jax.random.split(key, 10)
    # conv1: 3x3, no bias (HWIO layout)
    w1 = 0.1 * jax.random.normal(ks[0], (3, 3, cin, cout), jnp.float32)
    g1 = 1.0 + 0.1 * jax.random.normal(ks[1], (cout,), jnp.float32)
    be1 = 0.1 * jax.random.normal(ks[2], (cout,), jnp.float32)
    rm1 = 0.1 * jax.random.normal(ks[3], (cout,), jnp.float32)
    rv1 = jnp.abs(jax.random.normal(ks[4], (cout,), jnp.float32)) + 0.5
    s1 = g1 / jnp.sqrt(rv1 + eps)
    b1 = be1 - rm1 * s1
    # conv2: 1x1, no bias, represented as (in, out) matmul weight
    w2 = 0.1 * jax.random.normal(ks[5], (cout, cout), jnp.float32)
    g2 = 1.0 + 0.1 * jax.random.normal(ks[6], (cout,), jnp.float32)
    be2 = 0.1 * jax.random.normal(ks[7], (cout,), jnp.float32)
    rm2 = 0.1 * jax.random.normal(ks[8], (cout,), jnp.float32)
    rv2 = jnp.abs(jax.random.normal(ks[9], (cout,), jnp.float32)) + 0.5
    s2 = g2 / jnp.sqrt(rv2 + eps)
    b2 = be2 - rm2 * s2
    return (
        w1,
        s1.reshape(1, cout),
        b1.reshape(1, cout),
        w2,
        s2.reshape(1, cout),
        b2.reshape(1, cout),
    )


def _reference(x_nchw, params):
    """Pure-JAX reference of the same forward pass (for correctness check)."""
    w1, s1, b1, w2, s2, b2 = params
    x = jnp.transpose(x_nchw, (0, 2, 3, 1))
    y = jax.lax.conv_general_dilated(
        x, w1, window_strides=(1, 1), padding="SAME",
        dimension_numbers=("NHWC", "HWIO", "NHWC"),
    )
    y = jnp.maximum(y * s1.reshape(1, 1, 1, -1) + b1.reshape(1, 1, 1, -1), 0.0)
    pooled = jnp.mean(y, axis=(1, 2))                       # (N, Cout)
    z = pooled @ w2
    att = jax.nn.sigmoid(z * s2 + b2)                       # (N, Cout)
    out = y * att[:, None, None, :]
    return jnp.transpose(out, (0, 3, 1, 2))


if __name__ == "__main__":
    N, Cin, Cout, H, W = 2, 4, 8, 16, 16
    key = jax.random.PRNGKey(0)
    k_x, k_p = jax.random.split(key)
    x = jax.random.normal(k_x, (N, Cin, H, W), jnp.float32)
    params = init_params(k_p, Cin, Cout)

    ref = jax.block_until_ready(_reference(x, params))

    # f32 MXU path: tight check against the pure-JAX reference.
    out_f32 = jax.block_until_ready(
        attention_refinement_block(x, params, conv_dtype=jnp.float32))
    assert out_f32.shape == (N, Cout, H, W)
    assert jnp.allclose(out_f32, ref, atol=1e-4, rtol=1e-4), "f32 path mismatch"

    # bf16 MXU path (default, fast): looser tolerance for bf16 conv inputs.
    out = jax.block_until_ready(attention_refinement_block(x, params))
    assert out.shape == (N, Cout, H, W)
    assert jnp.allclose(out, ref, atol=2e-2, rtol=2e-2), "bf16 path mismatch"

    print("KERNEL_OK")
</pallas_src>

<mosaic_0001>
module attributes {stable_mosaic.version = 11 : i64} {
  func.func @_arb_kernel(%arg0: i32, %arg1: memref<1x4x256xf32, #tpu.memory_space<vmem>>, %arg2: memref<9x8x8xf32, #tpu.memory_space<vmem>>, %arg3: memref<8x1xf32, #tpu.memory_space<vmem>>, %arg4: memref<8x8xf32, #tpu.memory_space<vmem>>, %arg5: memref<8x1xf32, #tpu.memory_space<vmem>>, %arg6: memref<1x8x256xf32, #tpu.memory_space<vmem>>, %arg7: memref<8x512xf32, #tpu.memory_space<vmem>>) attributes {dimension_semantics = [#tpu.dimension_semantics<parallel>], iteration_bounds = array<i64: 2>, scalar_prefetch = 0 : i64, scratch_operands = 1 : i64, tpu.core_type = #tpu.core_type<tc>, window_params = [{transform_indices = @transform_0, window_bounds = array<i64: 1, 4, 256>}, {pipeline_mode = #tpu.pipeline_mode<synchronous>, transform_indices = @transform_1, window_bounds = array<i64: 9, 8, 8>}, {pipeline_mode = #tpu.pipeline_mode<synchronous>, transform_indices = @transform_2, window_bounds = array<i64: 8, 1>}, {pipeline_mode = #tpu.pipeline_mode<synchronous>, transform_indices = @transform_3, window_bounds = array<i64: 8, 8>}, {pipeline_mode = #tpu.pipeline_mode<synchronous>, transform_indices = @transform_4, window_bounds = array<i64: 8, 1>}, {transform_indices = @transform_5, window_bounds = array<i64: 1, 8, 256>}]} {
    %cst = arith.constant 0.000000e+00 : f32
    %0 = vector.broadcast %cst : f32 to vector<8x128xf32>
    %c0 = arith.constant 0 : index
    %c0_0 = arith.constant 0 : index
    %1 = vector.load %arg7[%c0, %c0_0] : memref<8x512xf32, #tpu.memory_space<vmem>>, vector<8x128xf32>
    tpu.vector_store %arg7[%c0, %c0_0], %0 {strides = array<i32>} : memref<8x512xf32, #tpu.memory_space<vmem>>, vector<8x128xf32>,
    %cst_1 = arith.constant 0.000000e+00 : f32
    %2 = vector.broadcast %cst_1 : f32 to vector<8x128xf32>
    %c0_2 = arith.constant 0 : index
    %c384 = arith.constant 384 : index
    %3 = vector.load %arg7[%c0_2, %c384] : memref<8x512xf32, #tpu.memory_space<vmem>>, vector<8x128xf32>
    tpu.vector_store %arg7[%c0_2, %c384], %2 {strides = array<i32>} : memref<8x512xf32, #tpu.memory_space<vmem>>, vector<8x128xf32>,
    %cst_3 = arith.constant 0.000000e+00 : f32
    %4 = vector.broadcast %cst_3 : f32 to vector<4x256xf32>
    %c4 = arith.constant 4 : index
    %c128 = arith.constant 128 : index
    %5 = vector.load %arg7[%c4, %c128] : memref<8x512xf32, #tpu.memory_space<vmem>>, vector<4x256xf32>
    tpu.vector_store %arg7[%c4, %c128], %4 {strides = array<i32>} : memref<8x512xf32, #tpu.memory_space<vmem>>, vector<4x256xf32>,
    %c0_4 = arith.constant 0 : index
    %c0_5 = arith.constant 0 : index
    %c0_6 = arith.constant 0 : index
    %6 = vector.load %arg1[%c0_4, %c0_5, %c0_6] : memref<1x4x256xf32, #tpu.memory_space<vmem>>, vector<1x4x256xf32>
    %7 = vector.shape_cast %6 : vector<1x4x256xf32> to vector<4x256xf32>
    %c0_7 = arith.constant 0 : index
    %c128_8 = arith.constant 128 : index
    %8 = vector.load %arg7[%c0_7, %c128_8] : memref<8x512xf32, #tpu.memory_space<vmem>>, vector<4x256xf32>
    tpu.vector_store %arg7[%c0_7, %c128_8], %7 {strides = array<i32>} : memref<8x512xf32, #tpu.memory_space<vmem>>, vector<4x256xf32>,
    %9 = tpu.iota {dimensions = array<i32: 1>} : vector<1x256xi32>
    %c16_i32 = arith.constant 16 : i32
    %c0_i32 = arith.constant 0 : i32
    %10 = arith.cmpi eq, %c16_i32, %c0_i32 : i32
    %c1_i32 = arith.constant 1 : i32
    %11 = arith.select %10, %c1_i32, %c16_i32 : i32
    %12 = vector.broadcast %11 : i32 to vector<1x256xi32>
    %13 = arith.remsi %9, %12 : vector<1x256xi32>
    %c0_i32_9 = arith.constant 0 : i32
    %14 = vector.broadcast %c0_i32_9 : i32 to vector<1x256xi32>
    %15 = arith.cmpi ne, %13, %14 : vector<1x256xi32>
    %c0_i32_10 = arith.constant 0 : i32
    %16 = vector.broadcast %c0_i32_10 : i32 to vector<1x256xi32>
    %17 = arith.cmpi slt, %13, %16 : vector<1x256xi32>
    %c0_i32_11 = arith.constant 0 : i32
    %18 = arith.cmpi slt, %11, %c0_i32_11 : i32
    %19 = vector.broadcast %18 : i1 to vector<1x256xi1>
    %20 = vector.broadcast %19 : vector<1x256xi1> to vector<1x256xi1>
    %21 = arith.xori %17, %20 : vector<1x256xi1>
    %22 = arith.andi %21, %15 : vector<1x256xi1>
    %23 = vector.broadcast %11 : i32 to vector<1x256xi32>
    %24 = arith.addi %13, %23 : vector<1x256xi32>
    %25 = arith.select %22, %24, %13 : vector<1x256xi1>, vector<1x256xi32>
    %c1_i32_12 = arith.constant 1 : i32
    %26 = vector.broadcast %c1_i32_12 : i32 to vector<1x256xi32>
    %27 = arith.cmpi sge, %25, %26 : vector<1x256xi32>
    %c14_i32 = arith.constant 14 : i32
    %28 = vector.broadcast %c14_i32 : i32 to vector<1x256xi32>
    %29 = arith.cmpi sle, %25, %28 : vector<1x256xi32>
    %c0_13 = arith.constant 0 : index
    %c111 = arith.constant 111 : index
    %30 = vector.load %arg7[%c0_13, %c111] : memref<8x512xf32, #tpu.memory_space<vmem>>, vector<8x256xf32>
    %cst_14 = arith.constant 0.000000e+00 : f32
    %31 = vector.broadcast %cst_14 : f32 to vector<8x256xf32>
    %32 = vector.shape_cast %27 : vector<1x256xi1> to vector<1x256xi1>
    %33 = vector.broadcast %32 : vector<1x256xi1> to vector<8x256xi1>
    %34 = arith.select %33, %30, %31 : vector<8x256xi1>, vector<8x256xf32>
    %c0_15 = arith.constant 0 : index
    %c0_16 = arith.constant 0 : index
    %c0_17 = arith.constant 0 : index
    %35 = vector.load %arg2[%c0_15, %c0_16, %c0_17] : memref<9x8x8xf32, #tpu.memory_space<vmem>>, vector<1x8x8xf32>
    %36 = vector.shape_cast %35 : vector<1x8x8xf32> to vector<8x8xf32>
    %cst_18 = arith.constant dense<0.000000e+00> : vector<8x256xf32>
    %37 = tpu.matmul %36, %34, %cst_18 {dimension_numbers = #tpu.dot_dimension_numbers<[1], [0], [0], [1], [0, 0, 1, 1], [], []>} : vector<8x8xf32>, vector<8x256xf32>, vector<8x256xf32> -> vector<8x256xf32>
    %c0_19 = arith.constant 0 : index
    %c112 = arith.constant 112 : index
    %38 = vector.load %arg7[%c0_19, %c112] : memref<8x512xf32, #tpu.memory_space<vmem>>, vector<8x256xf32>
    %c1 = arith.constant 1 : index
    %c0_20 = arith.constant 0 : index
    %c0_21 = arith.constant 0 : index
    %39 = vector.load %arg2[%c1, %c0_20, %c0_21] : memref<9x8x8xf32, #tpu.memory_space<vmem>>, vector<1x8x8xf32>
    %40 = vector.shape_cast %39 : vector<1x8x8xf32> to vector<8x8xf32>
    %cst_22 = arith.constant dense<0.000000e+00> : vector<8x256xf32>
    %41 = tpu.matmul %40, %38, %cst_22 {dimension_numbers = #tpu.dot_dimension_numbers<[1], [0], [0], [1], [0, 0, 1, 1], [], []>} : vector<8x8xf32>, vector<8x256xf32>, vector<8x256xf32> -> vector<8x256xf32>
    %42 = arith.addf %37, %41 : vector<8x256xf32>
    %c0_23 = arith.constant 0 : index
    %c113 = arith.constant 113 : index
    %43 = vector.load %arg7[%c0_23, %c113] : memref<8x512xf32, #tpu.memory_space<vmem>>, vector<8x256xf32>
    %cst_24 = arith.constant 0.000000e+00 : f32
    %44 = vector.broadcast %cst_24 : f32 to vector<8x256xf32>
    %45 = vector.shape_cast %29 : vector<1x256xi1> to vector<1x256xi1>
    %46 = vector.broadcast %45 : vector<1x256xi1> to vector<8x256xi1>
    %47 = arith.select %46, %43, %44 : vector<8x256xi1>, vector<8x256xf32>
    %c2 = arith.constant 2 : index
    %c0_25 = arith.constant 0 : index
    %c0_26 = arith.constant 0 : index
    %48 = vector.load %arg2[%c2, %c0_25, %c0_26] : memref<9x8x8xf32, #tpu.memory_space<vmem>>, vector<1x8x8xf32>
    %49 = vector.shape_cast %48 : vector<1x8x8xf32> to vector<8x8xf32>
    %cst_27 = arith.constant dense<0.000000e+00> : vector<8x256xf32>
    %50 = tpu.matmul %49, %47, %cst_27 {dimension_numbers = #tpu.dot_dimension_numbers<[1], [0], [0], [1], [0, 0, 1, 1], [], []>} : vector<8x8xf32>, vector<8x256xf32>, vector<8x256xf32> -> vector<8x256xf32>
    %51 = arith.addf %42, %50 : vector<8x256xf32>
    %c0_28 = arith.constant 0 : index
    %c127 = arith.constant 127 : index
    %52 = vector.load %arg7[%c0_28, %c127] : memref<8x512xf32, #tpu.memory_space<vmem>>, vector<8x256xf32>
    %cst_29 = arith.constant 0.000000e+00 : f32
    %53 = vector.broadcast %cst_29 : f32 to vector<8x256xf32>
    %54 = vector.shape_cast %27 : vector<1x256xi1> to vector<1x256xi1>
    %55 = vector.broadcast %54 : vector<1x256xi1> to vector<8x256xi1>
    %56 = arith.select %55, %52, %53 : vector<8x256xi1>, vector<8x256xf32>
    %c3 = arith.constant 3 : index
    %c0_30 = arith.constant 0 : index
    %c0_31 = arith.constant 0 : index
    %57 = vector.load %arg2[%c3, %c0_30, %c0_31] : memref<9x8x8xf32, #tpu.memory_space<vmem>>, vector<1x8x8xf32>
    %58 = vector.shape_cast %57 : vector<1x8x8xf32> to vector<8x8xf32>
    %cst_32 = arith.constant dense<0.000000e+00> : vector<8x256xf32>
    %59 = tpu.matmul %58, %56, %cst_32 {dimension_numbers = #tpu.dot_dimension_numbers<[1], [0], [0], [1], [0, 0, 1, 1], [], []>} : vector<8x8xf32>, vector<8x256xf32>, vector<8x256xf32> -> vector<8x256xf32>
    %60 = arith.addf %51, %59 : vector<8x256xf32>
    %c0_33 = arith.constant 0 : index
    %c128_34 = arith.constant 128 : index
    %61 = vector.load %arg7[%c0_33, %c128_34] : memref<8x512xf32, #tpu.memory_space<vmem>>, vector<8x256xf32>
    %c4_35 = arith.constant 4 : index
    %c0_36 = arith.constant 0 : index
    %c0_37 = arith.constant 0 : index
    %62 = vector.load %arg2[%c4_35, %c0_36, %c0_37] : memref<9x8x8xf32, #tpu.memory_space<vmem>>, vector<1x8x8xf32>
    %63 = vector.shape_cast %62 : vector<1x8x8xf32> to vector<8x8xf32>
    %cst_38 = arith.constant dense<0.000000e+00> : vector<8x256xf32>
    %64 = tpu.matmul %63, %61, %cst_38 {dimension_numbers = #tpu.dot_dimension_numbers<[1], [0], [0], [1], [0, 0, 1, 1], [], []>} : vector<8x8xf32>, vector<8x256xf32>, vector<8x256xf32> -> vector<8x256xf32>
    %65 = arith.addf %60, %64 : vector<8x256xf32>
    %c0_39 = arith.constant 0 : index
    %c129 = arith.constant 129 : index
    %66 = vector.load %arg7[%c0_39, %c129] : memref<8x512xf32, #tpu.memory_space<vmem>>, vector<8x256xf32>
    %cst_40 = arith.constant 0.000000e+00 : f32
    %67 = vector.broadcast %cst_40 : f32 to vector<8x256xf32>
    %68 = vector.shape_cast %29 : vector<1x256xi1> to vector<1x256xi1>
    %69 = vector.broadcast %68 : vector<1x256xi1> to vector<8x256xi1>
    %70 = arith.select %69, %66, %67 : vector<8x256xi1>, vector<8x256xf32>
    %c5 = arith.constant 5 : index
    %c0_41 = arith.constant 0 : index
    %c0_42 = arith.constant 0 : index
    %71 = vector.load %arg2[%c5, %c0_41, %c0_42] : memref<9x8x8xf32, #tpu.memory_space<vmem>>, vector<1x8x8xf32>
    %72 = vector.shape_cast %71 : vector<1x8x8xf32> to vector<8x8xf32>
    %cst_43 = arith.constant dense<0.000000e+00> : vector<8x256xf32>
    %73 = tpu.matmul %72, %70, %cst_43 {dimension_numbers = #tpu.dot_dimension_numbers<[1], [0], [0], [1], [0, 0, 1, 1], [], []>} : vector<8x8xf32>, vector<8x256xf32>, vector<8x256xf32> -> vector<8x256xf32>
    %74 = arith.addf %65, %73 : vector<8x256xf32>
    %c0_44 = arith.constant 0 : index
    %c143 = arith.constant 143 : index
    %75 = vector.load %arg7[%c0_44, %c143] : memref<8x512xf32, #tpu.memory_space<vmem>>, vector<8x256xf32>
    %cst_45 = arith.constant 0.000000e+00 : f32
    %76 = vector.broadcast %cst_45 : f32 to vector<8x256xf32>
    %77 = vector.shape_cast %27 : vector<1x256xi1> to vector<1x256xi1>
    %78 = vector.broadcast %77 : vector<1x256xi1> to vector<8x256xi1>
    %79 = arith.select %78, %75, %76 : vector<8x256xi1>, vector<8x256xf32>
    %c6 = arith.constant 6 : index
    %c0_46 = arith.constant 0 : index
    %c0_47 = arith.constant 0 : index
    %80 = vector.load %arg2[%c6, %c0_46, %c0_47] : memref<9x8x8xf32, #tpu.memory_space<vmem>>, vector<1x8x8xf32>
    %81 = vector.shape_cast %80 : vector<1x8x8xf32> to vector<8x8xf32>
    %cst_48 = arith.constant dense<0.000000e+00> : vector<8x256xf32>
    %82 = tpu.matmul %81, %79, %cst_48 {dimension_numbers = #tpu.dot_dimension_numbers<[1], [0], [0], [1], [0, 0, 1, 1], [], []>} : vector<8x8xf32>, vector<8x256xf32>, vector<8x256xf32> -> vector<8x256xf32>
    %83 = arith.addf %74, %82 : vector<8x256xf32>
    %c0_49 = arith.constant 0 : index
    %c144 = arith.constant 144 : index
    %84 = vector.load %arg7[%c0_49, %c144] : memref<8x512xf32, #tpu.memory_space<vmem>>, vector<8x256xf32>
    %c7 = arith.constant 7 : index
    %c0_50 = arith.constant 0 : index
    %c0_51 = arith.constant 0 : index
    %85 = vector.load %arg2[%c7, %c0_50, %c0_51] : memref<9x8x8xf32, #tpu.memory_space<vmem>>, vector<1x8x8xf32>
    %86 = vector.shape_cast %85 : vector<1x8x8xf32> to vector<8x8xf32>
    %cst_52 = arith.constant dense<0.000000e+00> : vector<8x256xf32>
    %87 = tpu.matmul %86, %84, %cst_52 {dimension_numbers = #tpu.dot_dimension_numbers<[1], [0], [0], [1], [0, 0, 1, 1], [], []>} : vector<8x8xf32>, vector<8x256xf32>, vector<8x256xf32> -> vector<8x256xf32>
    %88 = arith.addf %83, %87 : vector<8x256xf32>
    %c0_53 = arith.constant 0 : index
    %c145 = arith.constant 145 : index
    %89 = vector.load %arg7[%c0_53, %c145] : memref<8x512xf32, #tpu.memory_space<vmem>>, vector<8x256xf32>
    %cst_54 = arith.constant 0.000000e+00 : f32
    %90 = vector.broadcast %cst_54 : f32 to vector<8x256xf32>
    %91 = vector.shape_cast %29 : vector<1x256xi1> to vector<1x256xi1>
    %92 = vector.broadcast %91 : vector<1x256xi1> to vector<8x256xi1>
    %93 = arith.select %92, %89, %90 : vector<8x256xi1>, vector<8x256xf32>
    %c8 = arith.constant 8 : index
    %c0_55 = arith.constant 0 : index
    %c0_56 = arith.constant 0 : index
    %94 = vector.load %arg2[%c8, %c0_55, %c0_56] : memref<9x8x8xf32, #tpu.memory_space<vmem>>, vector<1x8x8xf32>
    %95 = vector.shape_cast %94 : vector<1x8x8xf32> to vector<8x8xf32>
    %cst_57 = arith.constant dense<0.000000e+00> : vector<8x256xf32>
    %96 = tpu.matmul %95, %93, %cst_57 {dimension_numbers = #tpu.dot_dimension_numbers<[1], [0], [0], [1], [0, 0, 1, 1], [], []>} : vector<8x8xf32>, vector<8x256xf32>, vector<8x256xf32> -> vector<8x256xf32>
    %97 = arith.addf %88, %96 : vector<8x256xf32>
    %c0_58 = arith.constant 0 : index
    %c0_59 = arith.constant 0 : index
    %98 = vector.load %arg3[%c0_58, %c0_59] : memref<8x1xf32, #tpu.memory_space<vmem>>, vector<8x1xf32>
    %99 = vector.broadcast %98 : vector<8x1xf32> to vector<8x256xf32>
    %100 = arith.addf %97, %99 : vector<8x256xf32>
    %cst_60 = arith.constant 0.000000e+00 : f32
    %101 = vector.broadcast %cst_60 : f32 to vector<8x256xf32>
    %102 = arith.maximumf %100, %101 : vector<8x256xf32>
    %cst_61 = arith.constant dense<0.000000e+00> : vector<8xf32>
    %103 = vector.multi_reduction <add>, %102, %cst_61 [1] : vector<8x256xf32> to vector<8xf32>
    %104 = vector.shape_cast %103 : vector<8xf32> to vector<8x1xf32>
    %cst_62 = arith.constant 3.906250e-03 : f32
    %105 = vector.broadcast %cst_62 : f32 to vector<8x1xf32>
    %106 = arith.mulf %104, %105 : vector<8x1xf32>
    %c0_63 = arith.constant 0 : index
    %c0_64 = arith.constant 0 : index
    %107 = vector.load %arg4[%c0_63, %c0_64] : memref<8x8xf32, #tpu.memory_space<vmem>>, vector<8x8xf32>
    %cst_65 = arith.constant dense<0.000000e+00> : vector<8x1xf32>
    %108 = tpu.matmul %107, %106, %cst_65 {dimension_numbers = #tpu.dot_dimension_numbers<[1], [0], [0], [1], [0, 0, 1, 1], [], []>} : vector<8x8xf32>, vector<8x1xf32>, vector<8x1xf32> -> vector<8x1xf32>
    %c0_66 = arith.constant 0 : index
    %c0_67 = arith.constant 0 : index
    %109 = vector.load %arg5[%c0_66, %c0_67] : memref<8x1xf32, #tpu.memory_space<vmem>>, vector<8x1xf32>
    %110 = arith.addf %108, %109 : vector<8x1xf32>
    %111 = arith.negf %110 : vector<8x1xf32>
    %112 = math.exp %111 : vector<8x1xf32>
    %cst_68 = arith.constant 1.000000e+00 : f32
    %113 = vector.broadcast %cst_68 : f32 to vector<8x1xf32>
    %114 = arith.addf %113, %112 : vector<8x1xf32>
    %115 = arith.divf %113, %114 : vector<8x1xf32>
    %116 = vector.broadcast %115 : vector<8x1xf32> to vector<8x256xf32>
    %117 = arith.mulf %102, %116 : vector<8x256xf32>
    %c0_69 = arith.constant 0 : index
    %c0_70 = arith.constant 0 : index
    %c0_71 = arith.constant 0 : index
    %118 = vector.load %arg6[%c0_69, %c0_70, %c0_71] : memref<1x8x256xf32, #tpu.memory_space<vmem>>, vector<1x8x256xf32>
    %119 = vector.shape_cast %118 : vector<1x8x256xf32> to vector<8x256xf32>
    %120 = vector.shape_cast %117 : vector<8x256xf32> to vector<1x8x256xf32>
    tpu.vector_store %arg6[%c0_69, %c0_70, %c0_71], %120 {strides = array<i32>} : memref<1x8x256xf32, #tpu.memory_space<vmem>>, vector<1x8x256xf32>,
    return
  }
  func.func @transform_0(%arg0: i32) -> (i32, i32, i32) {
    %c0_i32 = arith.constant 0 : i32
    %c0_i32_0 = arith.constant 0 : i32
    %c0_i32_1 = arith.constant 0 : i32
    return %arg0, %c0_i32, %c0_i32_0 : i32, i32, i32
  }
  func.func @transform_1(%arg0: i32) -> (i32, i32, i32) {
    %c0_i32 = arith.constant 0 : i32
    %c0_i32_0 = arith.constant 0 : i32
    %c0_i32_1 = arith.constant 0 : i32
    %c0_i32_2 = arith.constant 0 : i32
    return %c0_i32, %c0_i32_0, %c0_i32_1 : i32, i32, i32
  }
  func.func @transform_2(%arg0: i32) -> (i32, i32) {
    %c0_i32 = arith.constant 0 : i32
    %c0_i32_0 = arith.constant 0 : i32
    %c0_i32_1 = arith.constant 0 : i32
    return %c0_i32, %c0_i32_0 : i32, i32
  }
  func.func @transform_3(%arg0: i32) -> (i32, i32) {
    %c0_i32 = arith.constant 0 : i32
    %c0_i32_0 = arith.constant 0 : i32
    %c0_i32_1 = arith.constant 0 : i32
    return %c0_i32, %c0_i32_0 : i32, i32
  }
  func.func @transform_4(%arg0: i32) -> (i32, i32) {
    %c0_i32 = arith.constant 0 : i32
    %c0_i32_0 = arith.constant 0 : i32
    %c0_i32_1 = arith.constant 0 : i32
    return %c0_i32, %c0_i32_0 : i32, i32
  }
  func.func @transform_5(%arg0: i32) -> (i32, i32, i32) {
    %c0_i32 = arith.constant 0 : i32
    %c0_i32_0 = arith.constant 0 : i32
    %c0_i32_1 = arith.constant 0 : i32
    return %arg0, %c0_i32, %c0_i32_0 : i32, i32, i32
  }
}

</mosaic_0001>

<bundles_post_ra>
// kernel: tpu_custom_call.1
= control target key start
LH: loop header
LB: loop body
LE: loop exit
PB: predicated region body
PF: predicated region fallthrough
CT: control target
= control target key end

     0   :  { %10 = vsyncpa [#allocation4], 0  ;;  %s1703_s0 = inlined_call_operand.vmem [shape: f32[2,4,256], index: 0, kind: input, shape index: {}]   ;;  %s1704_s1 = inlined_call_operand.vmem [shape: f32[9,8,8], index: 1, kind: input, shape index: {}]   ;;  %s1705_s2 = inlined_call_operand.vmem [shape: f32[8,1], index: 2, kind: input, shape index: {}]   ;;  %s1706_s3 = inlined_call_operand.vmem [shape: f32[8,8], index: 3, kind: input, shape index: {}]   ;;  %s1707_s4 = inlined_call_operand.vmem [shape: f32[8,1], index: 4, kind: input, shape index: {}]   ;;  %s1708_s5 = inlined_call_operand.hbm [shape: f32[2,8,256], index: 5, kind: output, shape index: {}]  }
   0x1   :  { %12 = vsyncpa [#allocation4 + $0x1], 0  ;;  %s1490_s18 = smov 0   ;;  %s1492_s19 = smov 0  }
   0x2   :  { %s1494_s20 = smov 0   ;;  %s1496_s21 = smov 0  }
   0x3 LB: > { %s1511_s22 = sadd.s32 4294967295, %s1446_s21   ;;  %s1260_s23 = sadd.s32 4294967294, %s1446_s21   ;;  %s1446_s21 = sphi %s1496_s21, %s1722_s21   ;;  %s1442_s20 = sphi %s1494_s20, %s1721_s20   ;;  %s1438_s19 = sphi %s1492_s19, %s1720_s19   ;;  %s1434_s18 = sphi %s1490_s18, %s1719_s18  }
   0x4   : > { %s1515_s24 = sadd.s32 1, %s1446_s21   ;;  %s135_s25 = sadd.s32 1, %s1442_s20 }
   0x5   : > { %s132_s26 = ssub.s32 %s1446_s21, %s1515_s24  ;;  %p145_p0 = scmp.ne.s32.totalorder %s1442_s20, %s1438_s19 }
   0x6   : > { %p133_p1 = scmp.eq.s32.totalorder %s132_s26, 0  ;;  %p146_p2 = scmp.eq.s32.totalorder %s1511_s22, 1 }
   0x7   : > { %p151_p3 = scmp.ne.s32.totalorder %s1438_s19, %s1434_s18  ;;  %p152_p4 = scmp.eq.s32.totalorder %s1260_s23, 1 }
   0x8   : > { %s1526_s27 = scalar_select %p133_p1, %s1442_s20, %s135_s25  }
   0x9   : > { %p1528_p5 = por %p146_p2, %p145_p0  ;;  %p1532_p6 = por %p152_p4, %p151_p3 }
   0xa   : > { %p1263_p7 = scmp.ge.s32.totalorder %s1446_s21, 1  ;;  %p190_p8 = scmp.lt.s32.totalorder %s1446_s21, 3 }
   0xc   : > { %p191_p9 = pnand %p1263_p7, %p190_p8 }
   0xd   : > { %v1448_v0 = vmov (!%p191_p9), 0.0   ;;  %s1449_s30 = smov (!%p191_p9), 127   ;;  %s1450_s6 = smov (!%p191_p9), 16   ;;  %vm301_vm0 = vcmask (!%p191_p9), 64512   ;;  %v1280_v5 = vld [vmem:[%s1704_s1 + $0x20] sm:$0xff] (!%p191_p9)  ;;  %v1456_v6 = vmov (!%p191_p9), 0   ;;  %v233_v8 = vlaneseq (!%p191_p9) }
   0xe   : > { %194 = sbr.rel (%p191_p9) target bundleno = 941 (0x3ad), region = 40  ;;  %724 = vrot.lane.b32.xlu1 (!%p191_p9), %v1448_v0, %s1449_s30  ;;  %225 = vst [vmem:[#allocation2 + $0x8] sm:$0xf0] (!%p191_p9), %v1448_v0  ;;  %226 = vst [vmem:[#allocation2 + $0x10] sm:$0xf0] (!%p191_p9), %v1448_v0  ;;  %290 = vrot.lane.b32.xlu0 (!%p191_p9), %v1448_v0, %s1450_s6  ;;  %p218_p10 = scmp.lt.s32.totalorder (!%p191_p9), %s1511_s22, 1 }
   0xf   : > { %705 = vmatprep.mubr.f32.mxu0 (!%p191_p9), %v1448_v0  ;;  %369 = vmatprep.mubr.f32.mxu1 (!%p191_p9), %v1448_v0  ;;  %s1451_s8 = smov (!%p191_p9), 113   ;;  %s1452_s15 = smov (!%p191_p9), 17   ;;  %v1082_v7 = vld [vmem:[%s1705_s2] sm:$0xff] (!%p191_p9)  ;;  %v234_v10 = vand.u32 (!%p191_p9), 127, %v233_v8  ;;  %vm726_vm1 = vcmask (!%p191_p9), 1039360   ;;  %v1282_v24 = vld [vmem:[%s1704_s1 + $0x28] sm:$0xff] (!%p191_p9) }
  0x10   : > { %s1453_s16 = smov (!%p191_p9), 15   ;;  %s1454_s17 = smov (!%p191_p9), 112   ;;  %1378 = vset.pattern.permute.xlu0 (!%p191_p9), %v1456_v6  ;;  %vm296_vm4 = vcmask (!%p191_p9), 130048   ;;  %vm280_vm5 = vcmask (!%p191_p9), 138240   ;;  %v1267_v29 = vld [vmem:[%s1704_s1 + $0x8] sm:$0xff] (!%p191_p9)  ;;  %vm817_vm7 = vcmask (!%p191_p9), 924672  }
  0x11   : > { %s1455_s23 = smov (!%p191_p9), 1   ;;  %s1457_s25 = smov (!%p191_p9), 111   ;;  %v235_v13 = vadd.s32 (!%p191_p9), 128, %v234_v10  ;;  %v240_v17 = vand.u32 (!%p191_p9), 15, %v234_v10  ;;  %v1286_v37 = vld [vmem:[%s1704_s1 + $0x30] sm:$0xff] (!%p191_p9)  ;;  %v287_v41 = vld [vmem:[%s1704_s1] sm:$0xff] (!%p191_p9) }
  0x12   : > { %815 = vrot.lane.b32.xlu1 (!%p191_p9), %v1448_v0, %s1451_s8  ;;  %vm460_vm9 = vcmask (!%p191_p9), 121856   ;;  %vm910_vm10 = vcmask (!%p191_p9), 916480   ;;  %v1290_v49 = vld [vmem:[%s1704_s1 + $0x38] sm:$0xff] (!%p191_p9)  ;;  %v1272_v52 = vld [vmem:[%s1704_s1 + $0x10] sm:$0xff] (!%p191_p9)  ;;  %vm551_vm11 = vcmask (!%p191_p9), 7168   ;;  %vm997_vm12 = vcmask (!%p191_p9), 908288  }
  0x13   : > { %v247_v14 = vand.u32 (!%p191_p9), 15, %v235_v13  ;;  %vm1567_vm3 = vcmp.le.s32.totalorder (!%p191_p9), %v240_v17, 14  ;;  %vm1590_vm8 = vcmp.ge.s32.totalorder (!%p191_p9), %v240_v17, 1  ;;  %v1292_v61 = vld [vmem:[%s1704_s1 + $0x40] sm:$0xff] (!%p191_p9)  ;;  %v1276_v63 = vld [vmem:[%s1704_s1 + $0x18] sm:$0xff] (!%p191_p9)  ;;  %vm1458_vm13 = vmmov (!%p191_p9), 0  }
  0x14   : > { %v1097_v17 = vld [vmem:[%s1707_s4] sm:$0xff] (!%p191_p9)  ;;  %s215_s10 = sand.u32 (!%p191_p9), 1, %s1438_s19  }
  0x15   : > { %s219_s7 = scalar_select %p218_p10, %s1511_s22, 1  ;;  %vm1563_vm2 = vcmp.le.s32.totalorder %v247_v14, 14  ;;  %vm1579_vm6 = vcmp.ge.s32.totalorder %v247_v14, 1 }
  0x16   : > { %s1264_s11 = sshll.u32 %s215_s10, 4 }
  0x17   : > { %s1303_s9 = sshll.u32 %s219_s7, 3  ;;  %s217_s13 = scalar_lea.vmem [#allocation3], %s1264_s11 }
  0x18   : > { %s222_s12 = scalar_lea.vmem %s1703_s0, %s1303_s9  ;;  %s1201_s14 = sshll.u32 %s217_s13, 4  ;;  %s1663_s14 = int_to_ptr.vmem [resolvable:$true] %s1201_s14 }
  0x19   : > { %v227_v1 = vld [vmem:[%s222_s12] sm:$0xff]  ;;  %s1304_s12 = sshll.u32 %s1511_s22, 8  ;;  %s1459_s22 = smov [#allocation3]  }
  0x1a   : > { %231 = vst [vmem:[#allocation2 + $0x8] sm:$0xf] %v227_v1  ;;  %v229_v2 = vcombine.high %v227_v1, %v227_v1  ;;  %s1388_s26 = sshll.u32 %s1459_s22, 4  ;;  %s1389_s26 = int_to_ptr.vmem [resolvable:$false] %s1388_s26 }
  0x1b   : > { %p1391_p0 = scmp.lt.s32.totalorder %s1663_s14, %s1389_s26 }
  0x1c   : > { %232 = vst [vmem:[#allocation2 + $0x10] sm:$0xf] %v229_v2 }
  0x21   : > { %v265_v3 = vld [vmem:[#allocation2 + $0x8] sm:$0xff] }
  0x22   : > { %292 = vrot.lane.b32.xlu0 %v265_v3, %s1450_s6  ;;  %720 = vrot.lane.b32.xlu1 %v265_v3, %s1449_s30 }
  0x23   : > { %v715_v4 = vld [vmem:[#allocation2 + $0x10] sm:$0xff] }
  0x24   : > { %641 = vmatprep.subr.mxu0 %v715_v4 }
  0x25   : > { %642 = vmatpush1.msra.mxu0 %v265_v3 }
  0x26   : > { %276 = vrot.lane.b32.xlu0 %v265_v3, %s1452_s15  ;;  %722 = vrot.lane.b32.xlu1 %v715_v4, %s1449_s30  ;;  %s1390_s30 = scalar_lea.vmem %s1389_s26, 512 }
  0x27   : > { %1281 = vmatmul.mubr.msk.f32.vlgmr.msra.gmra.mrb[0].mxu0 %vm301_vm0, %v1280_v5 }
  0x28   : > { %802 = vmatprep.mubr.f32.mxu0 %v1448_v0 }
  0x2a   : > { %294 = vrot.lane.b32.xlu0 %v715_v4, %s1450_s6  ;;  %278 = vrot.lane.b32.xlu1 %v715_v4, %s1452_s15 }
  0x2e   : > { %813 = vrot.lane.b32.xlu0 %v715_v4, %s1451_s8  ;;  %811 = vrot.lane.b32.xlu1 %v265_v3, %s1451_s8 }
  0x32   : > { %274 = vrot.lane.b32.xlu0 %v1448_v0, %s1452_s15  ;;  %458 = vrot.lane.b32.xlu1 %v715_v4, %s1453_s16 }
  0x36   : > { %456 = vrot.lane.b32.xlu0 %v265_v3, %s1453_s16  ;;  %908 = vrot.lane.b32.xlu1 %v1448_v0, %s1454_s17 }
  0x3a   : > { %906 = vrot.lane.b32.xlu0 %v715_v4, %s1454_s17  ;;  %904 = vrot.lane.b32.xlu1 %v265_v3, %s1454_s17  ;;  %s1661_s17 = scalar_lea.hbm %s1708_s5, %s1304_s12 }
  0x3e   : > { %454 = vrot.lane.b32.xlu0 %v1448_v0, %s1453_s16  ;;  %549 = vrot.lane.b32.xlu1 %v715_v4, %s1455_s23 }
  0x42   : > { %547 = vrot.lane.b32.xlu0 %v265_v3, %s1455_s23  ;;  %995 = vrot.lane.b32.xlu1 %v1448_v0, %s1457_s25 }
  0x46   : > { %993 = vrot.lane.b32.xlu0 %v715_v4, %s1457_s25  ;;  %991 = vrot.lane.b32.xlu1 %v265_v3, %s1457_s25  ;;  %s1384_s25 = scalar_lea.vmem %s1663_s14, 256 }
  0x47   : > { %p1385_p11 = scmp.ne.s32.totalorder %s1663_s14, %s1384_s25  ;;  %p1392_p1 = scmp.lt.s32.totalorder %s1390_s30, %s1384_s25 }
  0x49   : > { %p1386_p12 = pnand %p1385_p11, %p1528_p5  ;;  %p1393_p2 = por %p1392_p1, %p1391_p0 }
  0x4a   : > { %545 = vrot.lane.b32.xlu0 %v1448_v0, %s1455_s23  ;;  %s1187_s23 = scalar_lea.sflag [#allocation4], %s215_s10 }
  0x4b   : > { %p1387_p13 = pneg %p1386_p12 }
  0x4d   : > { %p1394_p3 = pnand %p1393_p2, %p1387_p13 }
  0x4e   : > { %1085 = vperm.xlu0 %1378, %v1082_v7  }
  0x80   : > { %v725_v9 = vpop.permute.xlu1 %724  ;;  %v291_v11 = vpop.permute.xlu0 %290 }
  0x84   : > { %v816_v12 = vpop.permute.xlu1 %815 }
  0x94   : > { %v293_v15 = vpop.permute.xlu0 %292  ;;  %v721_v16 = vpop.permute.xlu1 %720 }
  0x95   : > { %v297_v30 = vsel %vm296_vm4, %v291_v11, %v293_v15 }
  0x98   : > { %v277_v19 = vpop.permute.xlu0 %276  ;;  %v723_v20 = vpop.permute.xlu1 %722 }
  0x99   : > { %v727_v22 = vsel %vm726_vm1, %v721_v16, %v723_v20  ;;  %v728_v23 = vsel %vm726_vm1, %v723_v20, %v725_v9  ;;  %v1096_v16 = vld [vmem:[%s1706_s3] sm:$0xff] }
  0x9a   : > { %1283 = vmatprep.subr.msk.mxu0 %vm1563_vm2, %v728_v23 }
  0x9b   : > { %1284 = vmatpush1.msk.msra.mxu0 %vm1567_vm3, %v727_v22 }
  0x9c   : > { %v295_v25 = vpop.permute.xlu0 %294  ;;  %v279_v26 = vpop.permute.xlu1 %278  ;;  %1285 = vmatmul.mubr.msk.f32.vlgmr.msra.gmra.mrb[0].mxu0 %vm301_vm0, %v1282_v24 }
  0x9d   : > { %v298_v27 = vsel %vm296_vm4, %v293_v15, %v295_v25  ;;  %893 = vmatprep.mubr.f32.mxu0 %v1448_v0  ;;  %v282_v31 = vsel %vm280_vm5, %v277_v19, %v279_v26 }
  0x9e   : > { %305 = vmatprep.subr.mxu1 %v298_v27 }
  0x9f   : > { %306 = vmatpush1.msra.mxu1 %v297_v30 }
  0xa0   : > { %1269 = vmatprep.subr.msk.mxu1 %vm1579_vm6, %v282_v31  ;;  %v814_v32 = vpop.permute.xlu0 %813  ;;  %v812_v33 = vpop.permute.xlu1 %811  ;;  %1268 = vmatmul.mubr.msk.f32.vlgmr.msra.gmra.mrb[0].mxu1 %vm301_vm0, %v1267_v29 }
  0xa1   : > { %v819_v35 = vsel %vm817_vm7, %v814_v32, %v816_v12  ;;  %v818_v36 = vsel %vm817_vm7, %v812_v33, %v814_v32  ;;  %443 = vmatprep.mubr.f32.mxu1 %v1448_v0 }
  0xa2   : > { %1287 = vmatprep.subr.msk.mxu0 %vm1579_vm6, %v819_v35 }
  0xa3   : > { %1288 = vmatpush1.msk.msra.mxu0 %vm1590_vm8, %v818_v36 }
  0xa4   : > { %v275_v38 = vpop.permute.xlu0 %274  ;;  %v459_v39 = vpop.permute.xlu1 %458  ;;  %1289 = vmatmul.mubr.msk.f32.vlgmr.msra.gmra.mrb[0].mxu0 %vm301_vm0, %v1286_v37 }
  0xa5   : > { %v281_v40 = vsel %vm280_vm5, %v275_v38, %v277_v19  ;;  %982 = vmatprep.mubr.f32.mxu0 %v1448_v0 }
  0xa6   : > { %1270 = vmatpush1.msk.msra.mxu1 %vm1590_vm8, %v281_v40 }
  0xa8   : > { %v457_v42 = vpop.permute.xlu0 %456  ;;  %v909_v43 = vpop.permute.xlu1 %908  ;;  %1271 = vmatmul.mubr.msk.f32.vlgmr.msra.gmra.mrb[0].mxu1 %vm301_vm0, %v287_v41 }
  0xa9   : > { %v462_v44 = vsel %vm460_vm9, %v457_v42, %v459_v39  ;;  %536 = vmatprep.mubr.f32.mxu1 %v1448_v0 }
  0xaa   : > { %1273 = vmatprep.subr.msk.mxu1 %vm1563_vm2, %v462_v44 }
  0xac   : > { %v907_v45 = vpop.permute.xlu0 %906  ;;  %v905_v46 = vpop.permute.xlu1 %904 }
  0xad   : > { %v911_v47 = vsel %vm910_vm10, %v905_v46, %v907_v45  ;;  %v912_v48 = vsel %vm910_vm10, %v907_v45, %v909_v43 }
  0xae   : > { %918 = vmatprep.subr.mxu0 %v912_v48 }
  0xaf   : > { %919 = vmatpush1.msra.mxu0 %v911_v47 }
  0xb0   : > { %v455_v50 = vpop.permute.xlu0 %454  ;;  %v550_v51 = vpop.permute.xlu1 %549  ;;  %1291 = vmatmul.mubr.msk.f32.vlgmr.msra.gmra.mrb[0].mxu0 %vm301_vm0, %v1290_v49 }
  0xb1   : > { %v461_v53 = vsel %vm460_vm9, %v455_v50, %v457_v42  ;;  %1073 = vmatprep.mubr.f32.mxu0 %v1448_v0 }
  0xb2   : > { %1274 = vmatpush1.msk.msra.mxu1 %vm1567_vm3, %v461_v53 }
  0xb3   : > { %1275 = vmatmul.mubr.msk.f32.vlgmr.msra.gmra.mrb[0].mxu1 %vm301_vm0, %v1272_v52 }
  0xb4   : > { %v548_v54 = vpop.permute.xlu0 %547  ;;  %v996_v55 = vpop.permute.xlu1 %995  ;;  %627 = vmatprep.mubr.f32.mxu1 %v1448_v0 }
  0xb5   : > { %v553_v56 = vsel %vm551_vm11, %v548_v54, %v550_v51 }
  0xb6   : > { %1277 = vmatprep.subr.msk.mxu1 %vm1579_vm6, %v553_v56 }
  0xb8   : > { %v994_v57 = vpop.permute.xlu0 %993  ;;  %v992_v58 = vpop.permute.xlu1 %991 }
  0xb9   : > { %v999_v59 = vsel %vm997_vm12, %v994_v57, %v996_v55  ;;  %v998_v60 = vsel %vm997_vm12, %v992_v58, %v994_v57 }
  0xba   : > { %1293 = vmatprep.subr.msk.mxu0 %vm1563_vm2, %v999_v59 }
  0xbb   : > { %1294 = vmatpush1.msk.msra.mxu0 %vm1567_vm3, %v998_v60 }
  0xbc   : > { %v546_v62 = vpop.permute.xlu0 %545  ;;  %1295 = vmatmul.mubr.msk.f32.vlgmr.msra.gmra.mrb[0].mxu0 %vm301_vm0, %v1292_v61 }
  0xbd   : > { %v552_v1 = vsel %vm551_vm11, %v546_v62, %v548_v54 }
  0xbe   : > { %1278 = vmatpush1.msk.msra.mxu1 %vm1590_vm8, %v552_v1 }
  0xbf   : > { %1279 = vmatmul.mubr.msk.f32.vlgmr.msra.gmra.mrb[0].mxu1 %vm301_vm0, %v1276_v63  ;;  %1307 = vmatprep.subr.mxu1 %v1448_v0 }
  0xc0   : > { %1309 = vmatprep.mubr.msk.f32.mxu1 %vm1458_vm13, %v1448_v0 }
  0xcd   : > { %v1086_v5 = vpop.permute.xlu0 %1085 }
 0x18f   : > { %v1075_v2 = vpop.f32.mrb[0].mxu0 }
 0x190   : > { %v1077_v3 = vpop.f32.mrb[1].mxu0 }
 0x192   : > { %v629_v4 = vpop.f32.mrb[0].mxu1 }
 0x193   : > { %v1312_v6 = vadd.f32 %v1075_v2, %v629_v4  ;;  %v631_v7 = vpop.f32.mrb[1].mxu1 }
 0x194   : > { %v1313_v8 = vadd.f32 %v1077_v3, %v631_v7 }
 0x195   : > { %v1088_v9 = vadd.f32 %v1312_v6, %v1086_v5 }
 0x196   : > { %v1089_v10 = vadd.f32 %v1313_v8, %v1086_v5 }
 0x197   : > { %v1090_v11 = vmax.f32 %v1088_v9, 0.0 }
 0x198   : > { %v1091_v12 = vmax.f32 %v1089_v10, 0.0 }
 0x19a   : > { %v1092_v13 = vadd.f32 %v1091_v12, %v1090_v11 }
 0x19c   : > { %1093 = vadd.xlane.f32.xlu1 %v1092_v13 }
 0x229   : > { %v1094_v14 = vpop.xlane.xlu1 %1093 }
 0x22a   : > { %v1095_v15 = vmul.f32 0.00390625, %v1094_v14 }
 0x22c   : > { %1308 = vmatpush3.msra.mxu1 %v1095_v15 }
 0x22d   : > { %1310 = vmatmul.mubr.msk.f32.vlgmr.msra.gmra.mrb[2].mxu1 %vm301_vm0, %v1096_v16 }
 0x300   : > { %v1167_v18 = vpop.f32.mrb[2].mxu1 }
 0x301   : > { %v1168_v19 = vadd.f32 %v1167_v18, %v1097_v17  ;;  %v1311_v20 = vpop.f32.mrb[3].mxu1 }
 0x303   : > { %v1297_v21 = vmul.f32 -1.442695, %v1168_v19 }
 0x305   : > { %1380 = vpow2.f32 %v1297_v21 }
 0x30f   : > { %v1381_v0 = vpop.eup %1380 }
 0x310   : > { %v1174_v22 = vadd.f32 1.0, %v1381_v0 }
 0x312   : > { %1382 = vrcp.f32 %v1174_v22 }
 0x31c   : > { %v1383_v23 = vpop.eup %1382 }
 0x31d   : > { %1179 = vperm.xlu0 %1378, %v1383_v23  }
 0x39c   : > { %v1180_v24 = vpop.permute.xlu0 %1179 }
 0x39d   : > { %v1182_v25 = vmul.f32 %v1180_v24, %v1090_v11  ;;  %v1183_v26 = vmul.f32 %v1180_v24, %v1091_v12 }
 0x39f   : > { %1184 = vst [vmem:[%s217_s13] sm:$0xff] %v1182_v25  ;;  %1185 = vst [vmem:[%s217_s13 + $0x8] sm:$0xff] %v1183_v26 }
 0x3a0   : > { %1397 = shalt.err (!%p1394_p3)
}
 0x3a1   : > { %s1398_s6 = scalar_lea.hbm %s1661_s17, 256  ;;  %s1402_s9 = scalar_lea.hbm %s1708_s5, 512 }
 0x3a2   : > { %p1399_p4 = scmp.ne.s32.totalorder %s1661_s17, %s1398_s6  ;;  %p1403_p9 = scmp.lt.u32.totalorder %s1661_s17, %s1708_s5 }
 0x3a3   : > { %p1404_p10 = scmp.lt.u32.totalorder %s1402_s9, %s1398_s6  ;;  %p1406_p12 = scmp.lt.u32.totalorder %s1398_s6, %s1661_s17 }
 0x3a4   : > { %p1400_p7 = pnand %p1399_p4, %p1528_p5 }
 0x3a5   : > { %p1405_p11 = por %p1404_p10, %p1403_p9 }
 0x3a6   : > { %p1401_p8 = pneg %p1400_p7 }
 0x3a7   : > { %p1407_p13 = por %p1406_p12, %p1405_p11 }
 0x3a9   : > { %p1408_p0 = pnand %p1407_p13, %p1401_p8 }
 0x3ab   : > { %1411 = shalt.err (!%p1408_p0)
}
 0x3ac   : > { %1328 = dma.vmem_to_hbm [thread:$0]  (%p1528_p5), %s1663_s14, 256, %s1661_s17, %s1187_s23  }
 0x3ad PF: > { %p1334_p1 = scmp.ge.s32.totalorder %s1446_s21, 2  ;;  %s1213_s12 = sand.u32 1, %s1434_s18  }
 0x3ae   : > { %s1214_s13 = scalar_lea.sflag [#allocation4], %s1213_s12 }
 0x3af   : > { %p1331_p2 = pnand %p1334_p1, %p1532_p6 }
 0x3b1   : > { %1429 = dma.done.wait (!%p1331_p2), %s1214_s13, 256  }
 0x3b2   : > { %1431 = vsyncadd (!%p1331_p2), %s1214_s13, 4294967040  ;;  %p15_p3 = scmp.ge.s32.totalorder %s1515_s24, 4   ;;  %s1719_s18 = smov %s1438_s19 }
 0x3b3   : > { %s1720_s19 = smov %s1442_s20  ;;  %s1721_s20 = smov %s1526_s27 }
 0x3b4   : > { %s1722_s21 = smov %s1515_s24  ;;  %17 = sbr.rel (!%p15_p3) target bundleno = 3 (0x3), region = 83 }
 0x3bb   :  { %1219 = vsyncpa [#allocation4], 1 }
 0x3bc   :  { %1221 = vsyncpa [#allocation4 + $0x1], 1 }

</bundles_post_ra>
